<compile_context>
chip_gen: v5e
topology: v5e:2x2
jax: 0.10.0
libtpu: 0.0.40
codegen_flags: <defaults>
</compile_context>

<pallas_src>
import functools

import jax
import jax.numpy as jnp
from jax.experimental import pallas as pl
from jax.experimental.pallas import tpu as pltpu


def _self_output_kernel(x_ref, res_ref, w_ref, p_ref, o_ref, *, eps, inv_h,
                        cast_bf16):
    # x_ref:   (TM, H)  tile of flattened hidden_states rows
    # res_ref: (TM, H)  matching tile of the residual input_tensor
    # w_ref:   (H, H)   dense weight, pre-transposed to [in, out] (resident)
    # p_ref:   (3, H)   packed f32 [bias; ln_gamma; ln_beta]
    x = x_ref[...]
    w = w_ref[...]
    if cast_bf16:
        x = x.astype(jnp.bfloat16)
        w = w.astype(jnp.bfloat16)

    # Dense: standard (M,K)x(K,N) contraction -> no in-kernel weight transpose.
    # MXU accumulates in f32 via preferred_element_type.
    h = jnp.dot(x, w, preferred_element_type=jnp.float32)

    b = p_ref[0:1, :]
    g = p_ref[1:2, :]
    beta = p_ref[2:3, :]

    # TODO(synk): dropout is identity in eval mode; training-mode stochastic
    # masking (pltpu.prng_random_bits) not implemented.

    # Bias + residual add, then LayerNorm over the hidden (lane) axis in f32.
    y = h + b + res_ref[...].astype(jnp.float32)

    # Two independent row reductions so the XLU passes are not serialized
    # through a "centered" intermediate.
    sum_y = jnp.sum(y, axis=-1, keepdims=True)
    sum_yy = jnp.sum(y * y, axis=-1, keepdims=True)
    mean = sum_y * inv_h
    var = jnp.maximum(sum_yy * inv_h - mean * mean, 0.0)
    out = (y - mean) * jax.lax.rsqrt(var + eps) * g + beta

    o_ref[...] = out.astype(o_ref.dtype)


def _round_up(x, m):
    return (x + m - 1) // m * m


def layout_roberta_self_output(hidden_states, input_tensor, w_dense, b_dense,
                               ln_gamma, ln_beta, *, eps=1e-12, tile_m=512,
                               matmul_in_bf16=False):
    """hidden_states, input_tensor: [B, S, H]; w_dense: [H, H] (PyTorch layout,
    i.e. weight[out, in]); b_dense, ln_gamma, ln_beta: [H]."""
    B, S, H = hidden_states.shape
    M = B * S
    dtype = hidden_states.dtype

    # Row tile: large (default 512) to amortize per-step overhead, a multiple
    # of 8 sublanes, capped so the parallel grid keeps >= 2 steps (v7x has 2
    # TensorCores; a 1-step grid would idle one of them for small M).
    tm = min(tile_m, max(8, _round_up(pl.cdiv(M, 2), 8)))
    tm = _round_up(tm, 8)
    grid_m = pl.cdiv(M, tm)

    # No wrapper-side padding / slicing: Pallas masks the ragged last tile's
    # writeback, so no extra HBM passes over the activation tensors.
    x2d = hidden_states.reshape(M, H)
    r2d = input_tensor.reshape(M, H)

    # One-time HBM-side transpose (amortized over all grid steps) so the kernel
    # never transposes the resident weight.
    w_t = w_dense.T
    if matmul_in_bf16:
        w_t = w_t.astype(jnp.bfloat16)

    # Pack bias / gamma / beta into a single, pre-promoted f32 (3, H) operand.
    params = jnp.stack([b_dense, ln_gamma, ln_beta], axis=0).astype(jnp.float32)

    kernel = functools.partial(_self_output_kernel, eps=float(eps),
                               inv_h=1.0 / H, cast_bf16=matmul_in_bf16)

    # Right-sized VMEM budget: x/res/out tiles double-buffered, weight bounded
    # at 2 buffers (fallback path), packed params, f32 epilogue temporaries,
    # plus compiler-scratch headroom. Capped at 96 MiB (v5e/v6e); the computed
    # value stays well under v7x's 64 MiB at realistic H/tile sizes.
    act_bytes = jnp.dtype(dtype).itemsize
    w_bytes = jnp.dtype(w_t.dtype).itemsize
    vmem_bytes = (3 * 2 * tm * H * act_bytes      # x, res, out (double-buffered)
                  + 2 * H * H * w_bytes           # weight (upper bound)
                  + 2 * 3 * H * 4                 # packed params
                  + 4 * tm * H * 4                # f32 epilogue temporaries
                  + (12 << 20))                   # headroom
    vmem_bytes = int(min(vmem_bytes, 96 << 20))

    def _call(single_buffer_resident):
        pm = {}
        if single_buffer_resident:
            pm = dict(pipeline_mode=pl.Buffered(1))
        return pl.pallas_call(
            kernel,
            out_shape=jax.ShapeDtypeStruct((M, H), dtype),
            grid_spec=pltpu.PrefetchScalarGridSpec(
                num_scalar_prefetch=0,
                grid=(grid_m,),
                in_specs=[
                    pl.BlockSpec((tm, H), lambda i: (i, 0)),        # x rows
                    pl.BlockSpec((tm, H), lambda i: (i, 0)),        # residual
                    pl.BlockSpec((H, H), lambda i: (0, 0), **pm),   # weight
                    pl.BlockSpec((3, H), lambda i: (0, 0), **pm),   # params
                ],
                out_specs=pl.BlockSpec((tm, H), lambda i: (i, 0)),
            ),
            compiler_params=pltpu.CompilerParams(
                dimension_semantics=("parallel",),
                vmem_limit_bytes=vmem_bytes,
            ),
        )(x2d, r2d, w_t, params)

    try:
        out2d = _call(single_buffer_resident=hasattr(pl, "Buffered"))
    except Exception:
        # Fallback if single-buffering resident blocks is unsupported here.
        out2d = _call(single_buffer_resident=False)

    return out2d.reshape(B, S, H)


def _reference(hidden_states, input_tensor, w_dense, b_dense, g, b, eps):
    h = jnp.einsum("bsh,oh->bso", hidden_states, w_dense) + b_dense
    y = h + input_tensor
    mean = jnp.mean(y, axis=-1, keepdims=True)
    var = jnp.mean((y - mean) ** 2, axis=-1, keepdims=True)
    return (y - mean) * jax.lax.rsqrt(var + eps) * g + b


if __name__ == "__main__":
    B, S, H = 2, 8, 32
    eps = 1e-12

    key = jax.random.PRNGKey(0)
    k_x, k_r, k_w, k_b, k_g, k_be = jax.random.split(key, 6)

    hidden_states = jax.random.normal(k_x, (B, S, H), dtype=jnp.float32)
    input_tensor = jax.random.normal(k_r, (B, S, H), dtype=jnp.float32)

    # Deterministic synthetic parameters (nn.Linear(H, H), nn.LayerNorm(H)).
    w_dense = jax.random.normal(k_w, (H, H), dtype=jnp.float32) * (1.0 / H ** 0.5)
    b_dense = jax.random.normal(k_b, (H,), dtype=jnp.float32) * 0.02
    ln_gamma = 1.0 + 0.01 * jax.random.normal(k_g, (H,), dtype=jnp.float32)
    ln_beta = 0.01 * jax.random.normal(k_be, (H,), dtype=jnp.float32)

    out = layout_roberta_self_output(hidden_states, input_tensor,
                                     w_dense, b_dense, ln_gamma, ln_beta,
                                     eps=eps)
    out = jax.block_until_ready(out)

    ref = _reference(hidden_states, input_tensor, w_dense, b_dense,
                     ln_gamma, ln_beta, eps)
    assert jnp.allclose(out, ref, atol=1e-5, rtol=1e-5), "mismatch vs reference"

    print("KERNEL_OK")
</pallas_src>

<mosaic_0001>
module attributes {stable_mosaic.version = 11 : i64} {
  func.func @_self_output_kernel(%arg0: i32, %arg1: memref<8x32xf32, #tpu.memory_space<vmem>>, %arg2: memref<8x32xf32, #tpu.memory_space<vmem>>, %arg3: memref<32x32xf32, #tpu.memory_space<vmem>>, %arg4: memref<3x32xf32, #tpu.memory_space<vmem>>, %arg5: memref<8x32xf32, #tpu.memory_space<vmem>>) attributes {dimension_semantics = [#tpu.dimension_semantics<parallel>], iteration_bounds = array<i64: 2>, scalar_prefetch = 0 : i64, scratch_operands = 0 : i64, tpu.core_type = #tpu.core_type<tc>, window_params = [{transform_indices = @transform_0, window_bounds = array<i64: 8, 32>}, {transform_indices = @transform_1, window_bounds = array<i64: 8, 32>}, {pipeline_mode = #tpu.pipeline_mode<synchronous>, transform_indices = @transform_2, window_bounds = array<i64: 32, 32>}, {pipeline_mode = #tpu.pipeline_mode<synchronous>, transform_indices = @transform_3, window_bounds = array<i64: 3, 32>}, {transform_indices = @transform_4, window_bounds = array<i64: 8, 32>}]} {
    %c0 = arith.constant 0 : index
    %c0_0 = arith.constant 0 : index
    %0 = vector.load %arg1[%c0, %c0_0] : memref<8x32xf32, #tpu.memory_space<vmem>>, vector<8x32xf32>
    %c0_1 = arith.constant 0 : index
    %c0_2 = arith.constant 0 : index
    %1 = vector.load %arg3[%c0_1, %c0_2] : memref<32x32xf32, #tpu.memory_space<vmem>>, vector<32x32xf32>
    %cst = arith.constant dense<0.000000e+00> : vector<8x32xf32>
    %2 = tpu.matmul %0, %1, %cst {dimension_numbers = #tpu.dot_dimension_numbers<[1], [0], [0], [1], [0, 0, 1, 1], [], []>} : vector<8x32xf32>, vector<32x32xf32>, vector<8x32xf32> -> vector<8x32xf32>
    %c0_3 = arith.constant 0 : index
    %c0_4 = arith.constant 0 : index
    %3 = vector.load %arg4[%c0_3, %c0_4] : memref<3x32xf32, #tpu.memory_space<vmem>>, vector<1x32xf32>
    %c1 = arith.constant 1 : index
    %c0_5 = arith.constant 0 : index
    %4 = vector.load %arg4[%c1, %c0_5] : memref<3x32xf32, #tpu.memory_space<vmem>>, vector<1x32xf32>
    %c2 = arith.constant 2 : index
    %c0_6 = arith.constant 0 : index
    %5 = vector.load %arg4[%c2, %c0_6] : memref<3x32xf32, #tpu.memory_space<vmem>>, vector<1x32xf32>
    %6 = vector.broadcast %3 : vector<1x32xf32> to vector<8x32xf32>
    %7 = arith.addf %2, %6 : vector<8x32xf32>
    %c0_7 = arith.constant 0 : index
    %c0_8 = arith.constant 0 : index
    %8 = vector.load %arg2[%c0_7, %c0_8] : memref<8x32xf32, #tpu.memory_space<vmem>>, vector<8x32xf32>
    %9 = arith.addf %7, %8 : vector<8x32xf32>
    %cst_9 = arith.constant dense<0.000000e+00> : vector<8xf32>
    %10 = vector.multi_reduction <add>, %9, %cst_9 [1] : vector<8x32xf32> to vector<8xf32>
    %11 = vector.shape_cast %10 : vector<8xf32> to vector<8x1xf32>
    %12 = arith.mulf %9, %9 : vector<8x32xf32>
    %cst_10 = arith.constant dense<0.000000e+00> : vector<8xf32>
    %13 = vector.multi_reduction <add>, %12, %cst_10 [1] : vector<8x32xf32> to vector<8xf32>
    %14 = vector.shape_cast %13 : vector<8xf32> to vector<8x1xf32>
    %cst_11 = arith.constant 3.125000e-02 : f32
    %15 = vector.broadcast %cst_11 : f32 to vector<8x1xf32>
    %16 = arith.mulf %11, %15 : vector<8x1xf32>
    %cst_12 = arith.constant 3.125000e-02 : f32
    %17 = vector.broadcast %cst_12 : f32 to vector<8x1xf32>
    %18 = arith.mulf %14, %17 : vector<8x1xf32>
    %19 = arith.mulf %16, %16 : vector<8x1xf32>
    %20 = arith.subf %18, %19 : vector<8x1xf32>
    %cst_13 = arith.constant 0.000000e+00 : f32
    %21 = vector.broadcast %cst_13 : f32 to vector<8x1xf32>
    %22 = arith.maximumf %20, %21 : vector<8x1xf32>
    %23 = vector.broadcast %16 : vector<8x1xf32> to vector<8x32xf32>
    %24 = arith.subf %9, %23 : vector<8x32xf32>
    %cst_14 = arith.constant 9.99999996E-13 : f32
    %25 = vector.broadcast %cst_14 : f32 to vector<8x1xf32>
    %26 = arith.addf %22, %25 : vector<8x1xf32>
    %27 = math.rsqrt %26 : vector<8x1xf32>
    %28 = vector.broadcast %27 : vector<8x1xf32> to vector<8x32xf32>
    %29 = arith.mulf %24, %28 : vector<8x32xf32>
    %30 = vector.broadcast %4 : vector<1x32xf32> to vector<8x32xf32>
    %31 = arith.mulf %29, %30 : vector<8x32xf32>
    %32 = vector.broadcast %5 : vector<1x32xf32> to vector<8x32xf32>
    %33 = arith.addf %31, %32 : vector<8x32xf32>
    %c0_15 = arith.constant 0 : index
    %c0_16 = arith.constant 0 : index
    %34 = vector.load %arg5[%c0_15, %c0_16] : memref<8x32xf32, #tpu.memory_space<vmem>>, vector<8x32xf32>
    tpu.vector_store %arg5[%c0_15, %c0_16], %33 {strides = array<i32>} : memref<8x32xf32, #tpu.memory_space<vmem>>, vector<8x32xf32>,
    return
  }
  func.func @transform_0(%arg0: i32) -> (i32, i32) {
    %c0_i32 = arith.constant 0 : i32
    %c0_i32_0 = arith.constant 0 : i32
    return %arg0, %c0_i32 : i32, i32
  }
  func.func @transform_1(%arg0: i32) -> (i32, i32) {
    %c0_i32 = arith.constant 0 : i32
    %c0_i32_0 = arith.constant 0 : i32
    return %arg0, %c0_i32 : i32, i32
  }
  func.func @transform_2(%arg0: i32) -> (i32, i32) {
    %c0_i32 = arith.constant 0 : i32
    %c0_i32_0 = arith.constant 0 : i32
    %c0_i32_1 = arith.constant 0 : i32
    return %c0_i32, %c0_i32_0 : i32, i32
  }
  func.func @transform_3(%arg0: i32) -> (i32, i32) {
    %c0_i32 = arith.constant 0 : i32
    %c0_i32_0 = arith.constant 0 : i32
    %c0_i32_1 = arith.constant 0 : i32
    return %c0_i32, %c0_i32_0 : i32, i32
  }
  func.func @transform_4(%arg0: i32) -> (i32, i32) {
    %c0_i32 = arith.constant 0 : i32
    %c0_i32_0 = arith.constant 0 : i32
    return %arg0, %c0_i32 : i32, i32
  }
}

module attributes {stable_mosaic.version = 11 : i64} {
  func.func @_self_output_kernel(%arg0: i32, %arg1: memref<8x32xf32, #tpu.memory_space<vmem>>, %arg2: memref<8x32xf32, #tpu.memory_space<vmem>>, %arg3: memref<32x32xf32, #tpu.memory_space<vmem>>, %arg4: memref<3x32xf32, #tpu.memory_space<vmem>>, %arg5: memref<8x32xf32, #tpu.memory_space<vmem>>) attributes {dimension_semantics = [#tpu.dimension_semantics<parallel>], iteration_bounds = array<i64: 2>, scalar_prefetch = 0 : i64, scratch_operands = 0 : i64, tpu.core_type = #tpu.core_type<tc>, window_params = [{transform_indices = @transform_0, window_bounds = array<i64: 8, 32>}, {transform_indices = @transform_1, window_bounds = array<i64: 8, 32>}, {pipeline_mode = #tpu.pipeline_mode<synchronous>, transform_indices = @transform_2, window_bounds = array<i64: 32, 32>}, {pipeline_mode = #tpu.pipeline_mode<synchronous>, transform_indices = @transform_3, window_bounds = array<i64: 3, 32>}, {transform_indices = @transform_4, window_bounds = array<i64: 8, 32>}]} {
    %c0 = arith.constant 0 : index
    %c0_0 = arith.constant 0 : index
    %0 = vector.load %arg1[%c0, %c0_0] : memref<8x32xf32, #tpu.memory_space<vmem>>, vector<8x32xf32>
    %c0_1 = arith.constant 0 : index
    %c0_2 = arith.constant 0 : index
    %1 = vector.load %arg3[%c0_1, %c0_2] : memref<32x32xf32, #tpu.memory_space<vmem>>, vector<32x32xf32>
    %cst = arith.constant dense<0.000000e+00> : vector<8x32xf32>
    %2 = tpu.matmul %0, %1, %cst {dimension_numbers = #tpu.dot_dimension_numbers<[1], [0], [0], [1], [0, 0, 1, 1], [], []>} : vector<8x32xf32>, vector<32x32xf32>, vector<8x32xf32> -> vector<8x32xf32>
    %c0_3 = arith.constant 0 : index
    %c0_4 = arith.constant 0 : index
    %3 = vector.load %arg4[%c0_3, %c0_4] : memref<3x32xf32, #tpu.memory_space<vmem>>, vector<1x32xf32>
    %c1 = arith.constant 1 : index
    %c0_5 = arith.constant 0 : index
    %4 = vector.load %arg4[%c1, %c0_5] : memref<3x32xf32, #tpu.memory_space<vmem>>, vector<1x32xf32>
    %c2 = arith.constant 2 : index
    %c0_6 = arith.constant 0 : index
    %5 = vector.load %arg4[%c2, %c0_6] : memref<3x32xf32, #tpu.memory_space<vmem>>, vector<1x32xf32>
    %6 = vector.broadcast %3 : vector<1x32xf32> to vector<8x32xf32>
    %7 = arith.addf %2, %6 : vector<8x32xf32>
    %c0_7 = arith.constant 0 : index
    %c0_8 = arith.constant 0 : index
    %8 = vector.load %arg2[%c0_7, %c0_8] : memref<8x32xf32, #tpu.memory_space<vmem>>, vector<8x32xf32>
    %9 = arith.addf %7, %8 : vector<8x32xf32>
    %cst_9 = arith.constant dense<0.000000e+00> : vector<8xf32>
    %10 = vector.multi_reduction <add>, %9, %cst_9 [1] : vector<8x32xf32> to vector<8xf32>
    %11 = vector.shape_cast %10 : vector<8xf32> to vector<8x1xf32>
    %12 = arith.mulf %9, %9 : vector<8x32xf32>
    %cst_10 = arith.constant dense<0.000000e+00> : vector<8xf32>
    %13 = vector.multi_reduction <add>, %12, %cst_10 [1] : vector<8x32xf32> to vector<8xf32>
    %14 = vector.shape_cast %13 : vector<8xf32> to vector<8x1xf32>
    %cst_11 = arith.constant 3.125000e-02 : f32
    %15 = vector.broadcast %cst_11 : f32 to vector<8x1xf32>
    %16 = arith.mulf %11, %15 : vector<8x1xf32>
    %cst_12 = arith.constant 3.125000e-02 : f32
    %17 = vector.broadcast %cst_12 : f32 to vector<8x1xf32>
    %18 = arith.mulf %14, %17 : vector<8x1xf32>
    %19 = arith.mulf %16, %16 : vector<8x1xf32>
    %20 = arith.subf %18, %19 : vector<8x1xf32>
    %cst_13 = arith.constant 0.000000e+00 : f32
    %21 = vector.broadcast %cst_13 : f32 to vector<8x1xf32>
    %22 = arith.maximumf %20, %21 : vector<8x1xf32>
    %23 = vector.broadcast %16 : vector<8x1xf32> to vector<8x32xf32>
    %24 = arith.subf %9, %23 : vector<8x32xf32>
    %cst_14 = arith.constant 9.99999996E-13 : f32
    %25 = vector.broadcast %cst_14 : f32 to vector<8x1xf32>
    %26 = arith.addf %22, %25 : vector<8x1xf32>
    %27 = math.rsqrt %26 : vector<8x1xf32>
    %28 = vector.broadcast %27 : vector<8x1xf32> to vector<8x32xf32>
    %29 = arith.mulf %24, %28 : vector<8x32xf32>
    %30 = vector.broadcast %4 : vector<1x32xf32> to vector<8x32xf32>
    %31 = arith.mulf %29, %30 : vector<8x32xf32>
    %32 = vector.broadcast %5 : vector<1x32xf32> to vector<8x32xf32>
    %33 = arith.addf %31, %32 : vector<8x32xf32>
    %c0_15 = arith.constant 0 : index
    %c0_16 = arith.constant 0 : index
    %34 = vector.load %arg5[%c0_15, %c0_16] : memref<8x32xf32, #tpu.memory_space<vmem>>, vector<8x32xf32>
    tpu.vector_store %arg5[%c0_15, %c0_16], %33 {strides = array<i32>} : memref<8x32xf32, #tpu.memory_space<vmem>>, vector<8x32xf32>,
    return
  }
  func.func @transform_0(%arg0: i32) -> (i32, i32) {
    %c0_i32 = arith.constant 0 : i32
    %c0_i32_0 = arith.constant 0 : i32
    return %arg0, %c0_i32 : i32, i32
  }
  func.func @transform_1(%arg0: i32) -> (i32, i32) {
    %c0_i32 = arith.constant 0 : i32
    %c0_i32_0 = arith.constant 0 : i32
    return %arg0, %c0_i32 : i32, i32
  }
  func.func @transform_2(%arg0: i32) -> (i32, i32) {
    %c0_i32 = arith.constant 0 : i32
    %c0_i32_0 = arith.constant 0 : i32
    %c0_i32_1 = arith.constant 0 : i32
    return %c0_i32, %c0_i32_0 : i32, i32
  }
  func.func @transform_3(%arg0: i32) -> (i32, i32) {
    %c0_i32 = arith.constant 0 : i32
    %c0_i32_0 = arith.constant 0 : i32
    %c0_i32_1 = arith.constant 0 : i32
    return %c0_i32, %c0_i32_0 : i32, i32
  }
  func.func @transform_4(%arg0: i32) -> (i32, i32) {
    %c0_i32 = arith.constant 0 : i32
    %c0_i32_0 = arith.constant 0 : i32
    return %arg0, %c0_i32 : i32, i32
  }
}

</mosaic_0001>

<bundles_post_ra>
// kernel: tpu_custom_call.1
= control target key start
LH: loop header
LB: loop body
LE: loop exit
PB: predicated region body
PF: predicated region fallthrough
CT: control target
= control target key end

     0   :  { %s991_s0 = inlined_call_operand.hbm [shape: f32[16,32], index: 0, kind: input, shape index: {}]   ;;  %s992_s1 = inlined_call_operand.hbm [shape: f32[16,32], index: 1, kind: input, shape index: {}]   ;;  %s993_s2 = inlined_call_operand.hbm [shape: f32[32,32], index: 2, kind: input, shape index: {}]   ;;  %s994_s3 = inlined_call_operand.hbm [shape: f32[3,32], index: 3, kind: input, shape index: {}]   ;;  %s995_s4 = inlined_call_operand.hbm [shape: f32[16,32], index: 4, kind: output, shape index: {}]  }
   0x1   :  { %996 = sst [smem:[#allocation17_spill]] %s993_s2 }
   0x2   :  { %997 = sst [smem:[#allocation18_spill]] %s994_s3 }
   0x3   :  { %9 = vsyncpa [#allocation3], 0 }
   0x4   :  { %11 = vsyncpa [#allocation3 + $0x1], 0 }
   0x5   :  { %12 = vsyncpa [#allocation6], 0 }
   0x6   :  { %14 = vsyncpa [#allocation6 + $0x1], 0 }
   0x7   :  { %15 = vsyncpa [#allocation9], 0 }
   0x8   :  { %16 = vsyncpa [#allocation4], 0 }
   0x9   :  { %18 = vsyncpa [#allocation4 + $0x1], 0  ;;  %s806_s15 = smov 0   ;;  %s808_s16 = smov 0  }
   0xa   :  { %s810_s17 = smov 0   ;;  %s812_s18 = smov 0  }
   0xb LB: > { %s998_s2 = sld [smem:[#allocation17_spill]]  ;;  %s830_s22 = sadd.s32 4294967295, %s775_s18   ;;  %s775_s18 = sphi %s812_s18, %s1012_s18   ;;  %s771_s17 = sphi %s810_s17, %s1011_s17   ;;  %s767_s16 = sphi %s808_s16, %s1010_s16   ;;  %s763_s15 = sphi %s806_s15, %s1009_s15  }
   0xc   : > { %p479_p0 = scmp.ge.s32.totalorder %s775_s18, 1  ;;  %p45_p1 = scmp.eq.s32.totalorder %s830_s22, 0 }
   0xd   : > { %p149_p2 = scmp.lt.s32.totalorder %s775_s18, 3  ;;  %s777_s24 = smov [#allocation7]  }
   0xe   : > { %s162_s25 = sshll.u32 %s777_s24, 4  ;;  %s1000_s3 = sld [smem:[#allocation18_spill]]  ;;  %s163_s25 = int_to_ptr.vmem [resolvable:$true] %s162_s25 }
   0xf   : > { %p835_p3 = pnand %p479_p0, %p149_p2  ;;  %s778_s29 = smov [#allocation8]  }
  0x10   : > { %s177_s30 = sshll.u32 %s778_s29, 4  ;;  %s779_s5 = smov 128   ;;  %s178_s30 = int_to_ptr.vmem [resolvable:$true] %s177_s30 }
  0x11   : > { %s160_s21 = sshll.u32 %s998_s2, 4  ;;  %p512_p4 = pneg %p835_p3  ;;  %s161_s21 = int_to_ptr.hbm [resolvable:$true] %s160_s21 }
  0x12   : > { %s780_s6 = smov 8   ;;  %s478_s7 = sadd.s32 4294967294, %s775_s18  }
  0x13   : > { %p513_p6 = pnand %p512_p4, %p45_p1  ;;  %s849_s8 = sadd.s32 1, %s775_s18  }
  0x14   : > { %s175_s28 = sshll.u32 %s1000_s3, 4  ;;  %s28_s9 = ssub.s32 %s775_s18, %s849_s8  ;;  %s176_s28 = int_to_ptr.hbm [resolvable:$true] %s175_s28 }
  0x15   : > { %515 = dma.hbm_to_vmem [thread:$0]  (!%p513_p6), %s161_s21, 512, %s163_s25, [#allocation6], %s779_s5, %s779_s5, %s780_s6  }
  0x16   : > { %518 = dma.hbm_to_vmem [thread:$0]  (!%p513_p6), %s176_s28, 64, %s178_s30, [#allocation9]  }
  0x17   : > { %s31_s10 = sadd.s32 1, %s771_s17  ;;  %p29_p7 = scmp.eq.s32.totalorder %s28_s9, 0 }
  0x18   : > { %p38_p8 = scmp.ne.s32.totalorder %s771_s17, %s767_s16  ;;  %p39_p9 = scmp.eq.s32.totalorder %s775_s18, 0 }
  0x19   : > { %p44_p10 = scmp.ne.s32.totalorder %s767_s16, %s763_s15  ;;  %p136_p13 = scmp.eq.s32.totalorder %s830_s22, 1 }
  0x1a   : > { %s860_s11 = scalar_select %p29_p7, %s771_s17, %s31_s10  }
  0x1b   : > { %p862_p11 = por %p39_p9, %p38_p8  ;;  %p868_p12 = por %p45_p1, %p44_p10 }
  0x1c   : > { %1001 = sst [smem:[#allocation16_spill]] %s860_s11  ;;  %p142_p0 = scmp.eq.s32.totalorder %s478_s7, 1 }
  0x1d   : > { %p532_p2 = scmp.lt.s32.totalorder %s775_s18, 2  ;;  %s188_s14 = sand.u32 1, %s771_s17  }
  0x1e   : > { %p875_p4 = por %p136_p13, %p38_p8  ;;  %p879_p6 = por %p142_p0, %p44_p10 }
  0x1f   : > { %s883_s21 = sshll.u32 %s188_s14, 3  ;;  %s484_s24 = sshll.u32 %s775_s18, 3 }
  0x20   : > { %s196_s27 = scalar_lea.hbm %s991_s0, %s484_s24  ;;  %s192_s28 = scalar_lea.vmem [#allocation2], %s883_s21 }
  0x21   : > { %s200_s29 = sshll.u32 %s192_s28, 4  ;;  %s198_s30 = sshll.u32 %s196_s27, 4  ;;  %s201_s29 = int_to_ptr.vmem [resolvable:$true] %s200_s29  ;;  %s199_s30 = int_to_ptr.hbm [resolvable:$true] %s198_s30 }
  0x22   : > { %p892_p7 = pnand %p532_p2, %p862_p11  ;;  %s215_s9 = scalar_lea.hbm %s992_s1, %s484_s24 }
  0x23   : > { %s207_s10 = sand.u32 1, %s775_s18   ;;  %s189_s2 = scalar_lea.sflag [#allocation3], %s188_s14 }
  0x24   : > { %s637_s25 = sshra.s32 %s199_s30, 4  ;;  %p641_p9 = pneg %p892_p7  ;;  %s638_s25 = int_to_ptr.hbm [resolvable:$true] %s637_s25 }
  0x25   : > { %s639_s26 = scalar_lea.hbm %s638_s25, 8  ;;  %s644_s28 = scalar_lea.hbm %s991_s0, 16 }
  0x26   : > { %p640_p8 = scmp.ne.s32.totalorder %s638_s25, %s639_s26  ;;  %p645_p13 = scmp.lt.s32.totalorder %s638_s25, %s991_s0 }
  0x27   : > { %p646_p0 = scmp.lt.s32.totalorder %s644_s28, %s639_s26 }
  0x28   : > { %p642_p10 = pnand %p641_p9, %p640_p8 }
  0x29   : > { %p647_p2 = por %p646_p0, %p645_p13 }
  0x2a   : > { %p643_p11 = pneg %p642_p10 }
  0x2c   : > { %p648_p5 = pnand %p647_p2, %p643_p11 }
  0x2e   : > { %651 = shalt.err (!%p648_p5)
}
  0x2f   : > { %522 = dma.hbm_to_vmem [thread:$0]  (!%p892_p7), %s199_s30, 128, %s201_s29, %s189_s2  }
  0x30   : > { %s217_s14 = sshll.u32 %s215_s9, 4  ;;  %s211_s24 = scalar_lea.vmem [#allocation5], %s883_s21  ;;  %s218_s14 = int_to_ptr.hbm [resolvable:$true] %s217_s14 }
  0x31   : > { %s219_s3 = sshll.u32 %s211_s24, 4  ;;  %s208_s12 = scalar_lea.sflag [#allocation6], %s207_s10  ;;  %s220_s3 = int_to_ptr.vmem [resolvable:$true] %s219_s3 }
  0x32   : > { %s667_s27 = sshra.s32 %s218_s14, 4  ;;  %s674_s28 = scalar_lea.hbm %s992_s1, 16  ;;  %s668_s27 = int_to_ptr.hbm [resolvable:$true] %s667_s27 }
  0x33   : > { %s669_s11 = scalar_lea.hbm %s668_s27, 8  ;;  %p675_p5 = scmp.lt.s32.totalorder %s668_s27, %s992_s1 }
  0x34   : > { %p670_p8 = scmp.ne.s32.totalorder %s668_s27, %s669_s11  ;;  %p676_p13 = scmp.lt.s32.totalorder %s674_s28, %s669_s11 }
  0x36   : > { %p672_p10 = pnand %p670_p8, %p641_p9  ;;  %p677_p0 = por %p676_p13, %p675_p5 }
  0x38   : > { %p673_p11 = pneg %p672_p10 }
  0x3a   : > { %p678_p2 = pnand %p677_p0, %p673_p11 }
  0x3c   : > { %681 = shalt.err (!%p678_p2)
}
  0x3d   : > { %525 = dma.hbm_to_vmem [thread:$0]  (!%p892_p7), %s218_s14, 128, %s220_s3, %s208_s12  }
  0x3e   : > { %228 = sbr.rel (%p835_p3) target bundleno = 373 (0x175), region = 36  ;;  %s928_s21 = sand.u32 (!%p835_p3), 1, %s767_s16  }
  0x3f   : > { %s931_s29 = sshll.u32 (!%p835_p3), %s928_s21, 3  ;;  %s231_s30 = scalar_lea.sflag (!%p835_p3), [#allocation3], %s928_s21 }
  0x40   : > { %s234_s11 = scalar_lea.vmem (!%p835_p3), [#allocation2], %s931_s29 }
  0x43   : > { %742 = dma.done.wait (%p868_p12), %s231_s30, 128  }
  0x44   : > { %744 = vsyncadd (%p868_p12), %s231_s30, 4294967168  ;;  %s240_s3 = sand.u32 1, %s830_s22   ;;  %s244_s5 = scalar_lea.vmem [#allocation5], %s931_s29 }
  0x45   : > { %s241_s23 = scalar_lea.sflag [#allocation6], %s240_s3 }
  0x46   : > { %746 = dma.done.wait (%p868_p12), %s241_s23, 128  }
  0x47   : > { %748 = vsyncadd (%p868_p12), %s241_s23, 4294967168 }
  0x48   : > { %750 = dma.done.wait (%p45_p1), [#allocation6], 512  }
  0x49   : > { %752 = vsyncadd (%p45_p1), [#allocation6], 4294966784 }
  0x4a   : > { %754 = dma.done.wait (%p45_p1), [#allocation9], 64  }
  0x4b   : > { %756 = vsyncadd (%p45_p1), [#allocation9], 4294967232  ;;  %v289_v0 = vld [vmem:[#allocation7 + $0x18] sm:$0xff]  ;;  %v288_v1 = vld [vmem:[#allocation7 + $0x10] sm:$0xff]  ;;  %vm294_vm0 = vcmask 261120   ;;  %s495_s13 = sshll.u32 %s830_s22, 3 }
  0x4c   : > { %310 = vmatpush.msra.mxu0 %v289_v0  ;;  %v287_v2 = vld [vmem:[#allocation7 + $0x8] sm:$0xff]  ;;  %v286_v3 = vld [vmem:[#allocation7] sm:$0xff]  ;;  %v318_v7 = vld [vmem:[%s244_s5] sm:$0xff]  ;;  %s361_s7 = scalar_lea.hbm %s995_s4, %s495_s13  ;;  %s284_s14 = scalar_lea.vmem [#allocation10], %s931_s29 }
  0x4d   : > { %v285_v4 = vld [vmem:[%s234_s11] sm:$0xff]  ;;  %s363_s24 = sshll.u32 %s284_s14, 4  ;;  %s365_s12 = sshll.u32 %s361_s7, 4  ;;  %s364_s24 = int_to_ptr.vmem [resolvable:$true] %s363_s24  ;;  %s366_s12 = int_to_ptr.hbm [resolvable:$true] %s365_s12 }
  0x4e   : > { %311 = vmatpush.msra.mxu0 %v288_v1  ;;  %v572_v5 = vld [vmem:[#allocation8] ss:$0 sm:$0xff]  ;;  %v573_v28 = vld [vmem:[#allocation8 + $0x1] ss:$0 sm:$0xff]  ;;  %v574_v31 = vld [vmem:[#allocation8 + $0x2] ss:$0 sm:$0xff] }
  0x4f   : > { %s351_s22 = scalar_lea.sflag [#allocation4], %s928_s21  ;;  %s711_s27 = sshra.s32 %s366_s12, 4  ;;  %s712_s27 = int_to_ptr.hbm [resolvable:$true] %s711_s27 }
  0x50   : > { %312 = vmatpush.msra.mxu0 %v287_v2  ;;  %s713_s25 = scalar_lea.hbm %s712_s27, 8  ;;  %s717_s6 = scalar_lea.hbm %s995_s4, 16 }
  0x51   : > { %p714_p1 = scmp.ne.s32.totalorder %s712_s27, %s713_s25  ;;  %p718_p7 = scmp.lt.s32.totalorder %s712_s27, %s995_s4 }
  0x52   : > { %313 = vmatpush.msra.mxu0 %v286_v3  ;;  %p719_p9 = scmp.lt.s32.totalorder %s717_s6, %s713_s25 }
  0x53   : > { %493 = vmatmul.msk.f32.vlgmr.msra.gmra.mxu0 %vm294_vm0, %v285_v4  ;;  %p715_p3 = pnand %p714_p1, %p875_p4 }
  0x54   : > { %p720_p8 = por %p719_p9, %p718_p7 }
  0x55   : > { %p716_p12 = pneg %p715_p3 }
  0x57   : > { %p721_p10 = pnand %p720_p8, %p716_p12 }
  0xd0   : > { %v315_v6 = vpop.f32.mrf.mxu0 }
  0xd1   : > { %v316_v8 = vadd.f32 %v572_v5, %v315_v6 }
  0xd3   : > { %v319_v9 = vadd.f32 %v318_v7, %v316_v8 }
  0xd5   : > { %v320_v10 = vsel %vm294_vm0, %v319_v9, 0.0  ;;  %v323_v11 = vmul.f32 %v319_v9, %v319_v9 }
  0xd6   : > { %321 = vadd.xlane.f32.xlu0 %v320_v10 }
  0xd7   : > { %v324_v12 = vsel %vm294_vm0, %v323_v11, 0.0 }
  0xde   : > { %325 = vadd.xlane.f32.xlu0 %v324_v12 }
 0x149   : > { %v322_v13 = vpop.xlane.xlu0 %321 }
 0x14a   : > { %v327_v14 = vmul.f32 0.03125, %v322_v13 }
 0x14c   : > { %v329_v16 = vmul.f32 %v327_v14, %v327_v14  ;;  %v332_v27 = vsub.f32 %v319_v9, %v327_v14 }
 0x151   : > { %v326_v15 = vpop.xlane.xlu0 %325 }
 0x152   : > { %v328_v17 = vmul.f32 0.03125, %v326_v15 }
 0x154   : > { %v330_v18 = vsub.f32 %v328_v17, %v329_v16 }
 0x156   : > { %v331_v19 = vmax.f32 %v330_v18, 0.0 }
 0x158   : > { %v333_v20 = vadd.f32 1e-12, %v331_v19 }
 0x15a   : > { %575 = vrsqrt.f32 %v333_v20  ;;  %vm340_vm2 = vweird.f32 %v333_v20 }
 0x160   : > { %v576_v21 = vpop.eup %575 }
 0x161   : > { %v335_v22 = vmul.f32 %v576_v21, %v333_v20  ;;  %vm341_vm1 = vweird.f32 %v576_v21 }
 0x162   : > { %vm342_vm3 = vmor %vm340_vm2, %vm341_vm1 }
 0x163   : > { %v336_v23 = vmul.f32 %v576_v21, %v335_v22 }
 0x165   : > { %v337_v24 = vmul.f32 0.5, %v336_v23 }
 0x167   : > { %v338_v25 = vsub.f32 1.5, %v337_v24 }
 0x169   : > { %v339_v26 = vmul.f32 %v576_v21, %v338_v25 }
 0x16b   : > { %v343_v29 = vsel %vm342_vm3, %v576_v21, %v339_v26 }
 0x16c   : > { %v344_v30 = vmul.f32 %v343_v29, %v332_v27 }
 0x16e   : > { %v346_v32 = vmul.f32 %v573_v28, %v344_v30 }
 0x170   : > { %v348_v33 = vadd.f32 %v574_v31, %v346_v32 }
 0x172   : > { %349 = vst.msk [vmem:[%s284_s14] sm:$0xff] %vm294_vm0, %v348_v33 }
 0x173   : > { %724 = shalt.err (!%p721_p10)
}
 0x174   : > { %510 = dma.vmem_to_hbm [thread:$0]  (%p875_p4), %s364_s24, 128, %s366_s12, %s351_s22  }
 0x175 PF: > { %s377_s21 = sand.u32 1, %s763_s15   ;;  %p1007_p11 = scmp.ge.s32.totalorder %s775_s18, 2 }
 0x176   : > { %s378_s30 = scalar_lea.sflag [#allocation4], %s377_s21 }
 0x177   : > { %p527_p5 = pnand %p1007_p11, %p879_p6 }
 0x179   : > { %p528_p13 = pneg %p527_p5 }
 0x17b   : > { %758 = dma.done.wait (%p528_p13), %s378_s30, 128  }
 0x17c   : > { %760 = vsyncadd (%p528_p13), %s378_s30, 4294967168  ;;  %s1008_s11 = sld [smem:[#allocation16_spill]]  ;;  %p21_p0 = scmp.ge.s32.totalorder %s849_s8, 4  }
 0x17d   : > { %s1009_s15 = smov %s767_s16  ;;  %s1010_s16 = smov %s771_s17 }
 0x17e   : > { %s1012_s18 = smov %s849_s8  ;;  %23 = sbr.rel (!%p21_p0) target bundleno = 11 (0xb), region = 102 }
 0x182   : > { %s1011_s17 = smov %s1008_s11 }
 0x183   :  { %384 = vsyncpa [#allocation3], 1 }
 0x184   :  { %386 = vsyncpa [#allocation3 + $0x1], 1 }
 0x185   :  { %387 = vsyncpa [#allocation6], 1 }
 0x186   :  { %389 = vsyncpa [#allocation6 + $0x1], 1 }
 0x187   :  { %390 = vsyncpa [#allocation9], 1 }
 0x188   :  { %391 = vsyncpa [#allocation4], 1 }
 0x189   :  { %393 = vsyncpa [#allocation4 + $0x1], 1 }

// kernel: tpu_custom_call.1
= control target key start
LH: loop header
LB: loop body
LE: loop exit
PB: predicated region body
PF: predicated region fallthrough
CT: control target
= control target key end

     0   :  { %s991_s0 = inlined_call_operand.hbm [shape: f32[16,32], index: 0, kind: input, shape index: {}]   ;;  %s992_s1 = inlined_call_operand.hbm [shape: f32[16,32], index: 1, kind: input, shape index: {}]   ;;  %s993_s2 = inlined_call_operand.hbm [shape: f32[32,32], index: 2, kind: input, shape index: {}]   ;;  %s994_s3 = inlined_call_operand.hbm [shape: f32[3,32], index: 3, kind: input, shape index: {}]   ;;  %s995_s4 = inlined_call_operand.hbm [shape: f32[16,32], index: 4, kind: output, shape index: {}]  }
   0x1   :  { %996 = sst [smem:[#allocation17_spill]] %s993_s2 }
   0x2   :  { %997 = sst [smem:[#allocation18_spill]] %s994_s3 }
   0x3   :  { %9 = vsyncpa [#allocation3], 0 }
   0x4   :  { %11 = vsyncpa [#allocation3 + $0x1], 0 }
   0x5   :  { %12 = vsyncpa [#allocation6], 0 }
   0x6   :  { %14 = vsyncpa [#allocation6 + $0x1], 0 }
   0x7   :  { %15 = vsyncpa [#allocation9], 0 }
   0x8   :  { %16 = vsyncpa [#allocation4], 0 }
   0x9   :  { %18 = vsyncpa [#allocation4 + $0x1], 0  ;;  %s806_s15 = smov 0   ;;  %s808_s16 = smov 0  }
   0xa   :  { %s810_s17 = smov 0   ;;  %s812_s18 = smov 0  }
   0xb LB: > { %s998_s2 = sld [smem:[#allocation17_spill]]  ;;  %s830_s22 = sadd.s32 4294967295, %s775_s18   ;;  %s775_s18 = sphi %s812_s18, %s1012_s18   ;;  %s771_s17 = sphi %s810_s17, %s1011_s17   ;;  %s767_s16 = sphi %s808_s16, %s1010_s16   ;;  %s763_s15 = sphi %s806_s15, %s1009_s15  }
   0xc   : > { %p479_p0 = scmp.ge.s32.totalorder %s775_s18, 1  ;;  %p45_p1 = scmp.eq.s32.totalorder %s830_s22, 0 }
   0xd   : > { %p149_p2 = scmp.lt.s32.totalorder %s775_s18, 3  ;;  %s777_s24 = smov [#allocation7]  }
   0xe   : > { %s162_s25 = sshll.u32 %s777_s24, 4  ;;  %s1000_s3 = sld [smem:[#allocation18_spill]]  ;;  %s163_s25 = int_to_ptr.vmem [resolvable:$true] %s162_s25 }
   0xf   : > { %p835_p3 = pnand %p479_p0, %p149_p2  ;;  %s778_s29 = smov [#allocation8]  }
  0x10   : > { %s177_s30 = sshll.u32 %s778_s29, 4  ;;  %s779_s5 = smov 128   ;;  %s178_s30 = int_to_ptr.vmem [resolvable:$true] %s177_s30 }
  0x11   : > { %s160_s21 = sshll.u32 %s998_s2, 4  ;;  %p512_p4 = pneg %p835_p3  ;;  %s161_s21 = int_to_ptr.hbm [resolvable:$true] %s160_s21 }
  0x12   : > { %s780_s6 = smov 8   ;;  %s478_s7 = sadd.s32 4294967294, %s775_s18  }
  0x13   : > { %p513_p6 = pnand %p512_p4, %p45_p1  ;;  %s849_s8 = sadd.s32 1, %s775_s18  }
  0x14   : > { %s175_s28 = sshll.u32 %s1000_s3, 4  ;;  %s28_s9 = ssub.s32 %s775_s18, %s849_s8  ;;  %s176_s28 = int_to_ptr.hbm [resolvable:$true] %s175_s28 }
  0x15   : > { %515 = dma.hbm_to_vmem [thread:$0]  (!%p513_p6), %s161_s21, 512, %s163_s25, [#allocation6], %s779_s5, %s779_s5, %s780_s6  }
  0x16   : > { %518 = dma.hbm_to_vmem [thread:$0]  (!%p513_p6), %s176_s28, 64, %s178_s30, [#allocation9]  }
  0x17   : > { %s31_s10 = sadd.s32 1, %s771_s17  ;;  %p29_p7 = scmp.eq.s32.totalorder %s28_s9, 0 }
  0x18   : > { %p38_p8 = scmp.ne.s32.totalorder %s771_s17, %s767_s16  ;;  %p39_p9 = scmp.eq.s32.totalorder %s775_s18, 0 }
  0x19   : > { %p44_p10 = scmp.ne.s32.totalorder %s767_s16, %s763_s15  ;;  %p136_p13 = scmp.eq.s32.totalorder %s830_s22, 1 }
  0x1a   : > { %s860_s11 = scalar_select %p29_p7, %s771_s17, %s31_s10  }
  0x1b   : > { %p862_p11 = por %p39_p9, %p38_p8  ;;  %p868_p12 = por %p45_p1, %p44_p10 }
  0x1c   : > { %1001 = sst [smem:[#allocation16_spill]] %s860_s11  ;;  %p142_p0 = scmp.eq.s32.totalorder %s478_s7, 1 }
  0x1d   : > { %p532_p2 = scmp.lt.s32.totalorder %s775_s18, 2  ;;  %s188_s14 = sand.u32 1, %s771_s17  }
  0x1e   : > { %p875_p4 = por %p136_p13, %p38_p8  ;;  %p879_p6 = por %p142_p0, %p44_p10 }
  0x1f   : > { %s883_s21 = sshll.u32 %s188_s14, 3  ;;  %s484_s24 = sshll.u32 %s775_s18, 3 }
  0x20   : > { %s196_s27 = scalar_lea.hbm %s991_s0, %s484_s24  ;;  %s192_s28 = scalar_lea.vmem [#allocation2], %s883_s21 }
  0x21   : > { %s200_s29 = sshll.u32 %s192_s28, 4  ;;  %s198_s30 = sshll.u32 %s196_s27, 4  ;;  %s201_s29 = int_to_ptr.vmem [resolvable:$true] %s200_s29  ;;  %s199_s30 = int_to_ptr.hbm [resolvable:$true] %s198_s30 }
  0x22   : > { %p892_p7 = pnand %p532_p2, %p862_p11  ;;  %s215_s9 = scalar_lea.hbm %s992_s1, %s484_s24 }
  0x23   : > { %s207_s10 = sand.u32 1, %s775_s18   ;;  %s189_s2 = scalar_lea.sflag [#allocation3], %s188_s14 }
  0x24   : > { %s637_s25 = sshra.s32 %s199_s30, 4  ;;  %p641_p9 = pneg %p892_p7  ;;  %s638_s25 = int_to_ptr.hbm [resolvable:$true] %s637_s25 }
  0x25   : > { %s639_s26 = scalar_lea.hbm %s638_s25, 8  ;;  %s644_s28 = scalar_lea.hbm %s991_s0, 16 }
  0x26   : > { %p640_p8 = scmp.ne.s32.totalorder %s638_s25, %s639_s26  ;;  %p645_p13 = scmp.lt.s32.totalorder %s638_s25, %s991_s0 }
  0x27   : > { %p646_p0 = scmp.lt.s32.totalorder %s644_s28, %s639_s26 }
  0x28   : > { %p642_p10 = pnand %p641_p9, %p640_p8 }
  0x29   : > { %p647_p2 = por %p646_p0, %p645_p13 }
  0x2a   : > { %p643_p11 = pneg %p642_p10 }
  0x2c   : > { %p648_p5 = pnand %p647_p2, %p643_p11 }
  0x2e   : > { %651 = shalt.err (!%p648_p5)
}
  0x2f   : > { %522 = dma.hbm_to_vmem [thread:$0]  (!%p892_p7), %s199_s30, 128, %s201_s29, %s189_s2  }
  0x30   : > { %s217_s14 = sshll.u32 %s215_s9, 4  ;;  %s211_s24 = scalar_lea.vmem [#allocation5], %s883_s21  ;;  %s218_s14 = int_to_ptr.hbm [resolvable:$true] %s217_s14 }
  0x31   : > { %s219_s3 = sshll.u32 %s211_s24, 4  ;;  %s208_s12 = scalar_lea.sflag [#allocation6], %s207_s10  ;;  %s220_s3 = int_to_ptr.vmem [resolvable:$true] %s219_s3 }
  0x32   : > { %s667_s27 = sshra.s32 %s218_s14, 4  ;;  %s674_s28 = scalar_lea.hbm %s992_s1, 16  ;;  %s668_s27 = int_to_ptr.hbm [resolvable:$true] %s667_s27 }
  0x33   : > { %s669_s11 = scalar_lea.hbm %s668_s27, 8  ;;  %p675_p5 = scmp.lt.s32.totalorder %s668_s27, %s992_s1 }
  0x34   : > { %p670_p8 = scmp.ne.s32.totalorder %s668_s27, %s669_s11  ;;  %p676_p13 = scmp.lt.s32.totalorder %s674_s28, %s669_s11 }
  0x36   : > { %p672_p10 = pnand %p670_p8, %p641_p9  ;;  %p677_p0 = por %p676_p13, %p675_p5 }
  0x38   : > { %p673_p11 = pneg %p672_p10 }
  0x3a   : > { %p678_p2 = pnand %p677_p0, %p673_p11 }
  0x3c   : > { %681 = shalt.err (!%p678_p2)
}
  0x3d   : > { %525 = dma.hbm_to_vmem [thread:$0]  (!%p892_p7), %s218_s14, 128, %s220_s3, %s208_s12  }
  0x3e   : > { %228 = sbr.rel (%p835_p3) target bundleno = 373 (0x175), region = 36  ;;  %s928_s21 = sand.u32 (!%p835_p3), 1, %s767_s16  }
  0x3f   : > { %s931_s29 = sshll.u32 (!%p835_p3), %s928_s21, 3  ;;  %s231_s30 = scalar_lea.sflag (!%p835_p3), [#allocation3], %s928_s21 }
  0x40   : > { %s234_s11 = scalar_lea.vmem (!%p835_p3), [#allocation2], %s931_s29 }
  0x43   : > { %742 = dma.done.wait (%p868_p12), %s231_s30, 128  }
  0x44   : > { %744 = vsyncadd (%p868_p12), %s231_s30, 4294967168  ;;  %s240_s3 = sand.u32 1, %s830_s22   ;;  %s244_s5 = scalar_lea.vmem [#allocation5], %s931_s29 }
  0x45   : > { %s241_s23 = scalar_lea.sflag [#allocation6], %s240_s3 }
  0x46   : > { %746 = dma.done.wait (%p868_p12), %s241_s23, 128  }
  0x47   : > { %748 = vsyncadd (%p868_p12), %s241_s23, 4294967168 }
  0x48   : > { %750 = dma.done.wait (%p45_p1), [#allocation6], 512  }
  0x49   : > { %752 = vsyncadd (%p45_p1), [#allocation6], 4294966784 }
  0x4a   : > { %754 = dma.done.wait (%p45_p1), [#allocation9], 64  }
  0x4b   : > { %756 = vsyncadd (%p45_p1), [#allocation9], 4294967232  ;;  %v289_v0 = vld [vmem:[#allocation7 + $0x18] sm:$0xff]  ;;  %v288_v1 = vld [vmem:[#allocation7 + $0x10] sm:$0xff]  ;;  %vm294_vm0 = vcmask 261120   ;;  %s495_s13 = sshll.u32 %s830_s22, 3 }
  0x4c   : > { %310 = vmatpush.msra.mxu0 %v289_v0  ;;  %v287_v2 = vld [vmem:[#allocation7 + $0x8] sm:$0xff]  ;;  %v286_v3 = vld [vmem:[#allocation7] sm:$0xff]  ;;  %v318_v7 = vld [vmem:[%s244_s5] sm:$0xff]  ;;  %s361_s7 = scalar_lea.hbm %s995_s4, %s495_s13  ;;  %s284_s14 = scalar_lea.vmem [#allocation10], %s931_s29 }
  0x4d   : > { %v285_v4 = vld [vmem:[%s234_s11] sm:$0xff]  ;;  %s363_s24 = sshll.u32 %s284_s14, 4  ;;  %s365_s12 = sshll.u32 %s361_s7, 4  ;;  %s364_s24 = int_to_ptr.vmem [resolvable:$true] %s363_s24  ;;  %s366_s12 = int_to_ptr.hbm [resolvable:$true] %s365_s12 }
  0x4e   : > { %311 = vmatpush.msra.mxu0 %v288_v1  ;;  %v572_v5 = vld [vmem:[#allocation8] ss:$0 sm:$0xff]  ;;  %v573_v28 = vld [vmem:[#allocation8 + $0x1] ss:$0 sm:$0xff]  ;;  %v574_v31 = vld [vmem:[#allocation8 + $0x2] ss:$0 sm:$0xff] }
  0x4f   : > { %s351_s22 = scalar_lea.sflag [#allocation4], %s928_s21  ;;  %s711_s27 = sshra.s32 %s366_s12, 4  ;;  %s712_s27 = int_to_ptr.hbm [resolvable:$true] %s711_s27 }
  0x50   : > { %312 = vmatpush.msra.mxu0 %v287_v2  ;;  %s713_s25 = scalar_lea.hbm %s712_s27, 8  ;;  %s717_s6 = scalar_lea.hbm %s995_s4, 16 }
  0x51   : > { %p714_p1 = scmp.ne.s32.totalorder %s712_s27, %s713_s25  ;;  %p718_p7 = scmp.lt.s32.totalorder %s712_s27, %s995_s4 }
  0x52   : > { %313 = vmatpush.msra.mxu0 %v286_v3  ;;  %p719_p9 = scmp.lt.s32.totalorder %s717_s6, %s713_s25 }
  0x53   : > { %493 = vmatmul.msk.f32.vlgmr.msra.gmra.mxu0 %vm294_vm0, %v285_v4  ;;  %p715_p3 = pnand %p714_p1, %p875_p4 }
  0x54   : > { %p720_p8 = por %p719_p9, %p718_p7 }
  0x55   : > { %p716_p12 = pneg %p715_p3 }
  0x57   : > { %p721_p10 = pnand %p720_p8, %p716_p12 }
  0xd0   : > { %v315_v6 = vpop.f32.mrf.mxu0 }
  0xd1   : > { %v316_v8 = vadd.f32 %v572_v5, %v315_v6 }
  0xd3   : > { %v319_v9 = vadd.f32 %v318_v7, %v316_v8 }
  0xd5   : > { %v320_v10 = vsel %vm294_vm0, %v319_v9, 0.0  ;;  %v323_v11 = vmul.f32 %v319_v9, %v319_v9 }
  0xd6   : > { %321 = vadd.xlane.f32.xlu0 %v320_v10 }
  0xd7   : > { %v324_v12 = vsel %vm294_vm0, %v323_v11, 0.0 }
  0xde   : > { %325 = vadd.xlane.f32.xlu0 %v324_v12 }
 0x149   : > { %v322_v13 = vpop.xlane.xlu0 %321 }
 0x14a   : > { %v327_v14 = vmul.f32 0.03125, %v322_v13 }
 0x14c   : > { %v329_v16 = vmul.f32 %v327_v14, %v327_v14  ;;  %v332_v27 = vsub.f32 %v319_v9, %v327_v14 }
 0x151   : > { %v326_v15 = vpop.xlane.xlu0 %325 }
 0x152   : > { %v328_v17 = vmul.f32 0.03125, %v326_v15 }
 0x154   : > { %v330_v18 = vsub.f32 %v328_v17, %v329_v16 }
 0x156   : > { %v331_v19 = vmax.f32 %v330_v18, 0.0 }
 0x158   : > { %v333_v20 = vadd.f32 1e-12, %v331_v19 }
 0x15a   : > { %575 = vrsqrt.f32 %v333_v20  ;;  %vm340_vm2 = vweird.f32 %v333_v20 }
 0x160   : > { %v576_v21 = vpop.eup %575 }
 0x161   : > { %v335_v22 = vmul.f32 %v576_v21, %v333_v20  ;;  %vm341_vm1 = vweird.f32 %v576_v21 }
 0x162   : > { %vm342_vm3 = vmor %vm340_vm2, %vm341_vm1 }
 0x163   : > { %v336_v23 = vmul.f32 %v576_v21, %v335_v22 }
 0x165   : > { %v337_v24 = vmul.f32 0.5, %v336_v23 }
 0x167   : > { %v338_v25 = vsub.f32 1.5, %v337_v24 }
 0x169   : > { %v339_v26 = vmul.f32 %v576_v21, %v338_v25 }
 0x16b   : > { %v343_v29 = vsel %vm342_vm3, %v576_v21, %v339_v26 }
 0x16c   : > { %v344_v30 = vmul.f32 %v343_v29, %v332_v27 }
 0x16e   : > { %v346_v32 = vmul.f32 %v573_v28, %v344_v30 }
 0x170   : > { %v348_v33 = vadd.f32 %v574_v31, %v346_v32 }
 0x172   : > { %349 = vst.msk [vmem:[%s284_s14] sm:$0xff] %vm294_vm0, %v348_v33 }
 0x173   : > { %724 = shalt.err (!%p721_p10)
}
 0x174   : > { %510 = dma.vmem_to_hbm [thread:$0]  (%p875_p4), %s364_s24, 128, %s366_s12, %s351_s22  }
 0x175 PF: > { %s377_s21 = sand.u32 1, %s763_s15   ;;  %p1007_p11 = scmp.ge.s32.totalorder %s775_s18, 2 }
 0x176   : > { %s378_s30 = scalar_lea.sflag [#allocation4], %s377_s21 }
 0x177   : > { %p527_p5 = pnand %p1007_p11, %p879_p6 }
 0x179   : > { %p528_p13 = pneg %p527_p5 }
 0x17b   : > { %758 = dma.done.wait (%p528_p13), %s378_s30, 128  }
 0x17c   : > { %760 = vsyncadd (%p528_p13), %s378_s30, 4294967168  ;;  %s1008_s11 = sld [smem:[#allocation16_spill]]  ;;  %p21_p0 = scmp.ge.s32.totalorder %s849_s8, 4  }
 0x17d   : > { %s1009_s15 = smov %s767_s16  ;;  %s1010_s16 = smov %s771_s17 }
 0x17e   : > { %s1012_s18 = smov %s849_s8  ;;  %23 = sbr.rel (!%p21_p0) target bundleno = 11 (0xb), region = 102 }
 0x182   : > { %s1011_s17 = smov %s1008_s11 }
 0x183   :  { %384 = vsyncpa [#allocation3], 1 }
 0x184   :  { %386 = vsyncpa [#allocation3 + $0x1], 1 }
 0x185   :  { %387 = vsyncpa [#allocation6], 1 }
 0x186   :  { %389 = vsyncpa [#allocation6 + $0x1], 1 }
 0x187   :  { %390 = vsyncpa [#allocation9], 1 }
 0x188   :  { %391 = vsyncpa [#allocation4], 1 }
 0x189   :  { %393 = vsyncpa [#allocation4 + $0x1], 1 }

</bundles_post_ra>
